<compile_context>
chip_gen: v5e
topology: v5e:2x2
jax: 0.10.0
libtpu: 0.0.40
codegen_flags: <defaults>
</compile_context>

<pallas_src>
import functools

import jax
import jax.numpy as jnp
from jax.experimental import pallas as pl
from jax.experimental.pallas import tpu as pltpu

_SQRT2 = 1.4142135623730951


def _round_up(a: int, b: int) -> int:
    return ((a + b - 1) // b) * b


def _covar_tile_kernel(params_ref, x_ref, xt_ref, ucol_ref, urow_ref, covar_ref):
    """One (TM, TN) tile of covar_x = exp(log_s - 0.5*||xi-xj||^2/ls^2) + (beta_k*u_i)*u_j.

    params (SMEM, f32[2], scalar-prefetched): [1/(ls*sqrt(2)), log(outputscale)]
    x_ref   (VMEM): (TM, D)   row block of x
    xt_ref  (VMEM): (D, TN)   column block of x^T (transposed in the wrapper)
    ucol_ref(VMEM): (TM, 1)   row block of beta_k * u
    urow_ref(VMEM): (1, TN)   column block of u
    covar_ref out : (TM, TN)
    """
    inv = params_ref[0]       # 1 / (lengthscale * sqrt(2))  -> folds the RBF 0.5
    log_s = params_ref[1]     # log(outputscale)             -> folded into the exp argument

    xs = x_ref[...] * inv     # (TM, D)
    xst = xt_ref[...] * inv   # (D, TN)

    d = x_ref.shape[1]

    # Squared distances via direct broadcast differences on the VPU (D is tiny, static loop).
    acc = None
    for k in range(d):
        diff = xs[:, k:k + 1] - xst[k:k + 1, :]    # (TM,1) - (1,TN) -> (TM,TN)
        sq = diff * diff
        acc = sq if acc is None else acc + sq

    # k_alpha = exp(log_s - d2)  (no negate, no post-multiply); beta term is a broadcast outer product.
    covar_ref[...] = jnp.exp(log_s - acc) + ucol_ref[...] * urow_ref[...]


def _covar_jnp(x, u, ls, outputscale, beta_k):
    diff = x[:, None, :] - x[None, :, :]
    d2 = jnp.sum(diff * diff, axis=-1) / (ls * ls)
    return outputscale * jnp.exp(-0.5 * d2) + u[None, :] * beta_k * u[:, None]


def _covar_pallas(x, u, ls, outputscale, beta_k, *, tm=256, tn=512):
    n, d = x.shape

    # Clamp tiles to the (padded) problem size; TM multiple of 8, TN multiple of 128 for lane-dense
    # unmasked stores. Tile budget (2 x TM x TN x 4B double-buffered output + temporaries) stays well
    # under the 32 MiB default scoped VMEM on all generations (incl. v7x's 64 MiB physical VMEM).
    tm = min(tm, _round_up(n, 8))
    tn = min(tn, _round_up(n, 128))
    n_r = _round_up(n, tm)      # padded row extent
    n_c = _round_up(n, tn)      # padded column extent

    x_rows = jnp.zeros((n_r, d), jnp.float32).at[:n].set(x)           # (n_r, D)
    x_cols_t = jnp.zeros((d, n_c), jnp.float32).at[:, :n].set(x.T)    # (D, n_c)
    u_col = jnp.zeros((n_r, 1), jnp.float32).at[:n, 0].set(beta_k * u)  # beta_k folded in
    u_row = jnp.zeros((1, n_c), jnp.float32).at[0, :n].set(u)

    params = jnp.stack([1.0 / (ls * _SQRT2), jnp.log(outputscale)]).astype(jnp.float32)

    grid = (n_r // tm, n_c // tn)
    covar_pad = pl.pallas_call(
        _covar_tile_kernel,
        out_shape=jax.ShapeDtypeStruct((n_r, n_c), jnp.float32),
        grid_spec=pltpu.PrefetchScalarGridSpec(
            num_scalar_prefetch=1,
            grid=grid,
            in_specs=[
                pl.BlockSpec((tm, d), lambda i, j, p: (i, 0)),   # x rows
                pl.BlockSpec((d, tn), lambda i, j, p: (0, j)),   # x^T cols
                pl.BlockSpec((tm, 1), lambda i, j, p: (i, 0)),   # beta_k * u (col)
                pl.BlockSpec((1, tn), lambda i, j, p: (0, j)),   # u (row)
            ],
            out_specs=pl.BlockSpec((tm, tn), lambda i, j, p: (i, j)),
        ),
        compiler_params=pltpu.CompilerParams(
            dimension_semantics=("parallel", "parallel"),        # shards across v7x's 2 TCs
        ),
        cost_estimate=pl.CostEstimate(
            flops=(3 * d + 3) * n_r * n_c,
            transcendentals=n_r * n_c,
            bytes_accessed=4 * (n_r * n_c + grid[1] * n_r * (d + 1) + grid[0] * n_c * (d + 1)),
        ),
    )(params, x_rows, x_cols_t, u_col, u_row)

    return covar_pad[:n, :n]


def linearizing_control_3_forward(x, u, params, *, compute_covar=True, min_n_for_pallas=256):
    """Returns (mean_x, cov_of_returned_MVN, covar_x_argument).

    The module returns MultivariateNormal(mean_x, eye(N)); covar_x is computed inside
    y_ref_from_alpha_beta (the hot path). Set compute_covar=False to skip the N^2 work
    entirely when no downstream consumer reads covar_x.

    params (f32[4]): [rbf_lengthscale, rbf_outputscale, beta_kernel_const, beta_mean_const]
    """
    x = jnp.asarray(x, jnp.float32)
    u = jnp.asarray(u, jnp.float32)
    params = jnp.asarray(params, jnp.float32)
    n, _ = x.shape

    ls, outputscale, beta_k, beta_m = params[0], params[1], params[2], params[3]

    # mean_x = alpha ZeroMean + beta ConstantMean * u  -> trivial scalar multiply, fused by XLA.
    mean_x = beta_m * u
    # The module's returned distribution uses the identity covariance.
    cov_returned = jnp.eye(n, dtype=jnp.float32)

    if not compute_covar:
        return mean_x, cov_returned, None

    if n < min_n_for_pallas:
        # Tiny problem: the pallas_call fixed cost dominates; plain jnp fuses for free.
        covar_x = _covar_jnp(x, u, ls, outputscale, beta_k)
    else:
        covar_x = _covar_pallas(x, u, ls, outputscale, beta_k)

    return mean_x, cov_returned, covar_x


def _reference(x, u, params):
    ls, outputscale, beta_k, beta_m = [params[i] for i in range(4)]
    diff = x[:, None, :] - x[None, :, :]
    d2 = jnp.sum(diff * diff, axis=-1) / (ls * ls)
    k_alpha = outputscale * jnp.exp(-0.5 * d2)
    covar_x = u[None, :] * beta_k * u[:, None] + k_alpha
    mean_x = beta_m * u
    return mean_x, covar_x


if __name__ == "__main__":
    key = jax.random.PRNGKey(0)
    ks = jax.random.split(key, 12)

    # Training data held by the module (unused by the prior forward pass).
    train_x_alpha = jax.random.normal(ks[0], (8, 2), jnp.float32)
    train_u_alpha = jax.random.normal(ks[1], (8,), jnp.float32)
    train_y_alpha = jax.random.normal(ks[2], (8,), jnp.float32)
    train_x_beta = jax.random.normal(ks[3], (8, 2), jnp.float32)
    train_u_beta = jax.random.normal(ks[4], (8,), jnp.float32)
    train_y_beta = jax.random.normal(ks[5], (8,), jnp.float32)
    _train_x = jnp.concatenate([train_x_alpha, train_x_beta], axis=0)   # (16, 2)
    _train_u = jnp.concatenate([train_u_alpha, train_u_beta], axis=0)   # (16,)
    _train_y = jnp.concatenate([train_y_alpha, train_y_beta], axis=0)   # (16,)

    # Deterministic hyperparameters. softplus(0) = 0.6931472 matches gpytorch's raw-param
    # defaults for lengthscale / outputscale / ConstantKernel; ConstantMean set to 0.5 so the
    # mean path is exercised.
    params = jnp.array([0.6931472, 0.6931472, 0.6931472, 0.5], dtype=jnp.float32)

    # --- Case 1: production-like tiny size (N=16) -> jnp fast path ---
    x16 = jax.random.normal(ks[6], (16, 2), jnp.float32)
    u16 = jax.random.normal(ks[7], (16,), jnp.float32)
    mean16, cov16, covar16 = linearizing_control_3_forward(x16, u16, params)
    jax.block_until_ready((mean16, cov16, covar16))
    ref_mean16, ref_covar16 = _reference(x16, u16, params)
    assert mean16.shape == (16,) and cov16.shape == (16, 16) and covar16.shape == (16, 16)
    assert jnp.allclose(mean16, ref_mean16, atol=1e-5, rtol=1e-5)
    assert jnp.allclose(covar16, ref_covar16, atol=1e-5, rtol=1e-5)
    assert jnp.allclose(cov16, jnp.eye(16, dtype=jnp.float32))

    # --- Case 2: ragged N=200 forced through the Pallas tiled kernel (exercises padding/slicing) ---
    x200 = jax.random.normal(ks[8], (200, 2), jnp.float32)
    u200 = jax.random.normal(ks[9], (200,), jnp.float32)
    mean200, cov200, covar200 = linearizing_control_3_forward(
        x200, u200, params, min_n_for_pallas=64)
    jax.block_until_ready((mean200, cov200, covar200))
    ref_mean200, ref_covar200 = _reference(x200, u200, params)
    assert covar200.shape == (200, 200)
    assert jnp.allclose(mean200, ref_mean200, atol=1e-5, rtol=1e-5)
    assert jnp.allclose(covar200, ref_covar200, atol=1e-5, rtol=1e-5)

    # --- Case 3: N=256 default Pallas dispatch ---
    x256 = jax.random.normal(ks[10], (256, 2), jnp.float32)
    u256 = jax.random.normal(ks[11], (256,), jnp.float32)
    mean256, cov256, covar256 = linearizing_control_3_forward(x256, u256, params)
    jax.block_until_ready((mean256, cov256, covar256))
    ref_mean256, ref_covar256 = _reference(x256, u256, params)
    assert covar256.shape == (256, 256)
    assert jnp.allclose(mean256, ref_mean256, atol=1e-5, rtol=1e-5)
    assert jnp.allclose(covar256, ref_covar256, atol=1e-5, rtol=1e-5)

    # --- Case 4: covar gated off (dead output) ---
    mg, cg, covg = linearizing_control_3_forward(x256, u256, params, compute_covar=False)
    jax.block_until_ready((mg, cg))
    assert covg is None and jnp.allclose(mg, ref_mean256, atol=1e-5, rtol=1e-5)

    print("KERNEL_OK")
</pallas_src>

<mosaic_0001>
module attributes {stable_mosaic.version = 11 : i64} {
  func.func @_covar_tile_kernel(%arg0: i32, %arg1: i32, %arg2: memref<2xf32, #tpu.memory_space<smem>>, %arg3: memref<200x2xf32, #tpu.memory_space<vmem>>, %arg4: memref<2x256xf32, #tpu.memory_space<vmem>>, %arg5: memref<200x1xf32, #tpu.memory_space<vmem>>, %arg6: memref<1x256xf32, #tpu.memory_space<vmem>>, %arg7: memref<200x256xf32, #tpu.memory_space<vmem>>) attributes {dimension_semantics = [#tpu.dimension_semantics<parallel>, #tpu.dimension_semantics<parallel>], iteration_bounds = array<i64: 1, 1>, scalar_prefetch = 1 : i64, scratch_operands = 0 : i64, tpu.core_type = #tpu.core_type<tc>, window_params = [{transform_indices = @transform_0, window_bounds = array<i64: 200, 2>}, {transform_indices = @transform_1, window_bounds = array<i64: 2, 256>}, {transform_indices = @transform_2, window_bounds = array<i64: 200, 1>}, {transform_indices = @transform_3, window_bounds = array<i64: 1, 256>}, {transform_indices = @transform_4, window_bounds = array<i64: 200, 256>}]} {
    %c0 = arith.constant 0 : index
    %0 = memref.load %arg2[%c0] : memref<2xf32, #tpu.memory_space<smem>>
    %c1 = arith.constant 1 : index
    %1 = memref.load %arg2[%c1] : memref<2xf32, #tpu.memory_space<smem>>
    %c0_0 = arith.constant 0 : index
    %c0_1 = arith.constant 0 : index
    %2 = vector.load %arg3[%c0_0, %c0_1] : memref<200x2xf32, #tpu.memory_space<vmem>>, vector<200x2xf32>
    %3 = vector.broadcast %0 : f32 to vector<200x2xf32>
    %4 = arith.mulf %2, %3 : vector<200x2xf32>
    %c0_2 = arith.constant 0 : index
    %c0_3 = arith.constant 0 : index
    %5 = vector.load %arg4[%c0_2, %c0_3] : memref<2x256xf32, #tpu.memory_space<vmem>>, vector<2x256xf32>
    %6 = vector.broadcast %0 : f32 to vector<2x256xf32>
    %7 = arith.mulf %5, %6 : vector<2x256xf32>
    %8 = vector.extract_strided_slice %4 {offsets = [0, 0], sizes = [200, 1], strides = [1, 1]} : vector<200x2xf32> to vector<200x1xf32>
    %9 = vector.extract_strided_slice %7 {offsets = [0, 0], sizes = [1, 256], strides = [1, 1]} : vector<2x256xf32> to vector<1x256xf32>
    %10 = vector.broadcast %8 : vector<200x1xf32> to vector<200x256xf32>
    %11 = vector.broadcast %9 : vector<1x256xf32> to vector<200x256xf32>
    %12 = arith.subf %10, %11 : vector<200x256xf32>
    %13 = arith.mulf %12, %12 : vector<200x256xf32>
    %14 = vector.extract_strided_slice %4 {offsets = [0, 1], sizes = [200, 1], strides = [1, 1]} : vector<200x2xf32> to vector<200x1xf32>
    %15 = vector.extract_strided_slice %7 {offsets = [1, 0], sizes = [1, 256], strides = [1, 1]} : vector<2x256xf32> to vector<1x256xf32>
    %16 = vector.broadcast %14 : vector<200x1xf32> to vector<200x256xf32>
    %17 = vector.broadcast %15 : vector<1x256xf32> to vector<200x256xf32>
    %18 = arith.subf %16, %17 : vector<200x256xf32>
    %19 = arith.mulf %18, %18 : vector<200x256xf32>
    %20 = arith.addf %13, %19 : vector<200x256xf32>
    %21 = vector.broadcast %1 : f32 to vector<200x256xf32>
    %22 = arith.subf %21, %20 : vector<200x256xf32>
    %23 = math.exp %22 : vector<200x256xf32>
    %c0_4 = arith.constant 0 : index
    %c0_5 = arith.constant 0 : index
    %24 = vector.load %arg5[%c0_4, %c0_5] : memref<200x1xf32, #tpu.memory_space<vmem>>, vector<200x1xf32>
    %c0_6 = arith.constant 0 : index
    %c0_7 = arith.constant 0 : index
    %25 = vector.load %arg6[%c0_6, %c0_7] : memref<1x256xf32, #tpu.memory_space<vmem>>, vector<1x256xf32>
    %26 = vector.broadcast %24 : vector<200x1xf32> to vector<200x256xf32>
    %27 = vector.broadcast %25 : vector<1x256xf32> to vector<200x256xf32>
    %28 = arith.mulf %26, %27 : vector<200x256xf32>
    %29 = arith.addf %23, %28 : vector<200x256xf32>
    %c0_8 = arith.constant 0 : index
    %c0_9 = arith.constant 0 : index
    %30 = vector.load %arg7[%c0_8, %c0_9] : memref<200x256xf32, #tpu.memory_space<vmem>>, vector<200x256xf32>
    tpu.vector_store %arg7[%c0_8, %c0_9], %29 {strides = array<i32>} : memref<200x256xf32, #tpu.memory_space<vmem>>, vector<200x256xf32>,
    return
  }
  func.func @transform_0(%arg0: i32, %arg1: i32, %arg2: memref<2xf32, #tpu.memory_space<smem>>) -> (i32, i32) {
    %c0_i32 = arith.constant 0 : i32
    %c0_i32_0 = arith.constant 0 : i32
    return %arg0, %c0_i32 : i32, i32
  }
  func.func @transform_1(%arg0: i32, %arg1: i32, %arg2: memref<2xf32, #tpu.memory_space<smem>>) -> (i32, i32) {
    %c0_i32 = arith.constant 0 : i32
    %c0_i32_0 = arith.constant 0 : i32
    return %c0_i32, %arg1 : i32, i32
  }
  func.func @transform_2(%arg0: i32, %arg1: i32, %arg2: memref<2xf32, #tpu.memory_space<smem>>) -> (i32, i32) {
    %c0_i32 = arith.constant 0 : i32
    %c0_i32_0 = arith.constant 0 : i32
    return %arg0, %c0_i32 : i32, i32
  }
  func.func @transform_3(%arg0: i32, %arg1: i32, %arg2: memref<2xf32, #tpu.memory_space<smem>>) -> (i32, i32) {
    %c0_i32 = arith.constant 0 : i32
    %c0_i32_0 = arith.constant 0 : i32
    return %c0_i32, %arg1 : i32, i32
  }
  func.func @transform_4(%arg0: i32, %arg1: i32, %arg2: memref<2xf32, #tpu.memory_space<smem>>) -> (i32, i32) {
    %c0_i32 = arith.constant 0 : i32
    return %arg0, %arg1 : i32, i32
  }
}

</mosaic_0001>

<bundles_post_ra>
// kernel: tpu_custom_call.1
= control target key start
LH: loop header
LB: loop body
LE: loop exit
PB: predicated region body
PF: predicated region fallthrough
CT: control target
= control target key end

     0   :  { %s1200_s21 = smov [#allocation3]   ;;  %s1957_s0 = inlined_call_operand.vmem [shape: f32[2], index: 0, kind: input, shape index: {}]   ;;  %s1958_s1 = inlined_call_operand.vmem [shape: f32[200,2], index: 1, kind: input, shape index: {}]   ;;  %s1959_s2 = inlined_call_operand.vmem [shape: f32[2,256], index: 2, kind: input, shape index: {}]   ;;  %s1960_s3 = inlined_call_operand.vmem [shape: f32[200,1], index: 3, kind: input, shape index: {}]   ;;  %s1961_s4 = inlined_call_operand.vmem [shape: f32[1,256], index: 4, kind: input, shape index: {}]   ;;  %s1962_s5 = inlined_call_operand.hbm [shape: f32[200,256], index: 5, kind: output, shape index: {}]  }
   0x1   :  { %s11_s20 = sshll.u32 %s1957_s0, 4  ;;  %s12_s20 = int_to_ptr.vmem [resolvable:$true] %s11_s20 }
   0x2   :  { %14 = dma.vmem_to_smem %s12_s20, 16, %s1200_s21, [#allocation2] }
   0x3   :  { %1196 = dma.done.wait [#allocation2], 16 }
   0x4   :  { %1197 = vsyncadd [#allocation2], 4294967280 }
   0x5   :  { %17 = sfence }
   0x6   :  { %s27_s22 = sld [smem:[#allocation3]]  ;;  %v1201_v0 = vmov 1   ;;  %v1202_v1 = vmov 0  }
   0x7   :  { %1056 = vset.pattern.permute.xlu0 %v1201_v0  ;;  %1053 = vset.pattern.permute.xlu2 %v1202_v1 }
   0x8   :  { %1052 = vset.pattern.permute.xlu1 %v1202_v1 }
   0x9   :  { %18 = vsyncpa [#allocation5], 0  ;;  %v33_v2 = vld [vmem:[%s1958_s1 + $0x20] sm:$0xff]  ;;  %v31_v3 = vld [vmem:[%s1958_s1 + $0x10] sm:$0xff]  ;;  %s1045_s9 = sld [smem:[#allocation3 + $0x1]]  ;;  %s1033_s21 = sshll.u32 %s1962_s5, 4  ;;  %s1034_s21 = int_to_ptr.hbm [resolvable:$true] %s1033_s21 }
   0xa   :  { %v34_v7 = vld [vmem:[%s1958_s1 + $0x28] sm:$0xff]  ;;  %v36_v8 = vld [vmem:[%s1958_s1 + $0x38] sm:$0xff]  ;;  %v37_v13 = vld [vmem:[%s1958_s1 + $0x40] sm:$0xff] }
   0xb   :  { %v32_v9 = vld [vmem:[%s1958_s1 + $0x18] sm:$0xff]  ;;  %v39_v14 = vld [vmem:[%s1958_s1 + $0x50] sm:$0xff]  ;;  %v42_v18 = vld [vmem:[%s1958_s1 + $0x68] sm:$0xff] }
   0xc   :  { %v1248_v4 = vstv %s27_s22  ;;  %v40_v17 = vld [vmem:[%s1958_s1 + $0x58] sm:$0xff]  ;;  %v43_v21 = vld [vmem:[%s1958_s1 + $0x70] sm:$0xff]  ;;  %v45_v22 = vld [vmem:[%s1958_s1 + $0x80] sm:$0xff]  ;;  %s1205_s22 = smov 16  }
   0xd   :  { %v1251_v5 = vmul.f32 %v1248_v4, %v33_v2  ;;  %v57_v6 = vmul.f32 %v1248_v4, %v31_v3  ;;  %v1265_v10 = vmul.f32 %v1248_v4, %v34_v7  ;;  %v62_v11 = vmul.f32 %v1248_v4, %v36_v8  ;;  %v46_v25 = vld [vmem:[%s1958_s1 + $0x88] sm:$0xff]  ;;  %v48_v26 = vld [vmem:[%s1958_s1 + $0x98] sm:$0xff]  ;;  %v49_v29 = vld [vmem:[%s1958_s1 + $0xa0] sm:$0xff] }
   0xe   :  { %v58_v12 = vmul.f32 %v1248_v4, %v32_v9  ;;  %v63_v15 = vmul.f32 %v1248_v4, %v37_v13  ;;  %v65_v16 = vmul.f32 %v1248_v4, %v39_v14  ;;  %v66_v19 = vmul.f32 %v1248_v4, %v40_v17  ;;  %v51_v30 = vld [vmem:[%s1958_s1 + $0xb0] sm:$0xff]  ;;  %v52_v33 = vld [vmem:[%s1958_s1 + $0xb8] sm:$0xff]  ;;  %v29_v34 = vld [vmem:[%s1958_s1] sm:$0xff] }
   0xf   :  { %104 = vperm.xlu2 %1053, %v1251_v5   ;;  %323 = vperm.xlu0 %1056, %v57_v6   ;;  %v68_v20 = vmul.f32 %v1248_v4, %v42_v18  ;;  %v69_v23 = vmul.f32 %v1248_v4, %v43_v21  ;;  %v71_v24 = vmul.f32 %v1248_v4, %v45_v22  ;;  %v30_v37 = vld [vmem:[%s1958_s1 + $0x8] sm:$0xff]  ;;  %v35_v39 = vld [vmem:[%s1958_s1 + $0x30] sm:$0xff]  ;;  %v41_v43 = vld [vmem:[%s1958_s1 + $0x60] sm:$0xff] }
  0x10   :  { %94 = vperm.xlu1 %1052, %v57_v6   ;;  %v1301_v27 = vmul.f32 %v1248_v4, %v46_v25  ;;  %v74_v28 = vmul.f32 %v1248_v4, %v48_v26  ;;  %v1312_v31 = vmul.f32 %v1248_v4, %v49_v29  ;;  %v77_v32 = vmul.f32 %v1248_v4, %v51_v30  ;;  %v38_v41 = vld [vmem:[%s1958_s1 + $0x48] sm:$0xff]  ;;  %v44_v46 = vld [vmem:[%s1958_s1 + $0x78] sm:$0xff]  ;;  %v47_v49 = vld [vmem:[%s1958_s1 + $0x90] sm:$0xff] }
  0x11   :  { %v1323_v35 = vmul.f32 %v1248_v4, %v52_v33  ;;  %v55_v36 = vmul.f32 %v1248_v4, %v29_v34  ;;  %v56_v38 = vmul.f32 %v1248_v4, %v30_v37  ;;  %v61_v40 = vmul.f32 %v1248_v4, %v35_v39  ;;  %v80_v50 = vld [vmem:[%s1959_s2] sm:$0xf]  ;;  %v50_v54 = vld [vmem:[%s1958_s1 + $0xa8] sm:$0xff]  ;;  %v723_v34 = vld [vmem:[%s1960_s3 + $0x10] sm:$0xff] }
  0x12   :  { %v64_v42 = vmul.f32 %v1248_v4, %v38_v41  ;;  %v67_v44 = vmul.f32 %v1248_v4, %v41_v43  ;;  %v70_v47 = vmul.f32 %v1248_v4, %v44_v46  ;;  %v73_v51 = vmul.f32 %v1248_v4, %v47_v49  ;;  %v53_v7 = vld [vmem:[%s1958_s1 + $0xc0] sm:$0xff]  ;;  %s1204_s1 = smov 256  }
  0x13   :  { %v81_v52 = vmul.f32 %v80_v50, %v1248_v4  ;;  %v76_v59 = vmul.f32 %v1248_v4, %v50_v54  ;;  %v79_v14 = vmul.f32 %v1248_v4, %v53_v7  ;;  %v729_v49 = vld [vmem:[%s1960_s3 + $0x40] sm:$0xff] }
  0x15   :  { %v414_v55 = vperm.slane %v81_v52, 1  ;;  %v415_v56 = vperm.slane %v81_v52, 3  ;;  %v208_v57 = vperm.slane %v81_v52, 0  ;;  %v209_v58 = vperm.slane %v81_v52, 2  ;;  %v724_v52 = vld [vmem:[%s1960_s3 + $0x18] sm:$0xff] }
  0x17   :  { %109 = vperm.xlu2 %1053, %v1265_v10   ;;  %343 = vperm.xlu0 %1056, %v62_v11   ;;  %v1370_v60 = vperm.slane %v414_v55, 1  ;;  %v1372_v61 = vperm.slane %v415_v56, 1  ;;  %v1374_v62 = vperm.slane %v208_v57, 0  ;;  %v1376_v63 = vperm.slane %v209_v58, 0 }
  0x18   :  { %99 = vperm.xlu1 %1052, %v58_v12  }
  0x1f   :  { %124 = vperm.xlu2 %1053, %v63_v15   ;;  %355 = vperm.xlu0 %1056, %v65_v16  }
  0x20   :  { %119 = vperm.xlu1 %1052, %v62_v11  }
  0x27   :  { %139 = vperm.xlu2 %1053, %v66_v19   ;;  %367 = vperm.xlu0 %1056, %v68_v20  }
  0x28   :  { %134 = vperm.xlu1 %1052, %v65_v16  }
  0x2f   :  { %154 = vperm.xlu2 %1053, %v69_v23   ;;  %379 = vperm.xlu0 %1056, %v71_v24  }
  0x30   :  { %149 = vperm.xlu1 %1052, %v68_v20   ;;  %v721_v20 = vld [vmem:[%s1960_s3] sm:$0xff] }
  0x37   :  { %169 = vperm.xlu2 %1053, %v1301_v27   ;;  %391 = vperm.xlu0 %1056, %v74_v28  }
  0x38   :  { %164 = vperm.xlu1 %1052, %v71_v24  }
  0x3f   :  { %184 = vperm.xlu2 %1053, %v1312_v31   ;;  %403 = vperm.xlu0 %1056, %v77_v32  }
  0x40   :  { %179 = vperm.xlu1 %1052, %v74_v28  }
  0x47   :  { %199 = vperm.xlu2 %1053, %v1323_v35   ;;  %1057 = vset.pattern.permute.xlu0 %v1202_v1 }
  0x48   :  { %194 = vperm.xlu1 %1052, %v77_v32   ;;  %84 = vperm.xlu0 %1057, %v55_v36  }
  0x4f   :  { %1055 = vset.pattern.permute.xlu2 %v1201_v0 }
  0x50   :  { %1054 = vset.pattern.permute.xlu1 %v1201_v0  ;;  %319 = vperm.xlu2 %1055, %v56_v38  }
  0x51   :  { %89 = vperm.xlu0 %1057, %v56_v38   ;;  %315 = vperm.xlu1 %1054, %v55_v36  }
  0x58   :  { %331 = vperm.xlu2 %1055, %v1251_v5  }
  0x59   :  { %114 = vperm.xlu0 %1057, %v61_v40   ;;  %327 = vperm.xlu1 %1054, %v58_v12  }
  0x60   :  { %339 = vperm.xlu2 %1055, %v61_v40  }
  0x61   :  { %129 = vperm.xlu0 %1057, %v64_v42   ;;  %335 = vperm.xlu1 %1054, %v1265_v10  }
  0x68   :  { %351 = vperm.xlu2 %1055, %v64_v42  }
  0x69   :  { %144 = vperm.xlu0 %1057, %v67_v44   ;;  %347 = vperm.xlu1 %1054, %v63_v15   ;;  %v1348_v45 = vpop.permute.xlu2 %104 }
  0x70   :  { %363 = vperm.xlu2 %1055, %v67_v44  }
  0x71   :  { %159 = vperm.xlu0 %1057, %v70_v47   ;;  %359 = vperm.xlu1 %1054, %v66_v19   ;;  %v1354_v48 = vpop.permute.xlu2 %109 }
  0x78   :  { %375 = vperm.xlu2 %1055, %v70_v47  }
  0x79   :  { %174 = vperm.xlu0 %1057, %v73_v51   ;;  %371 = vperm.xlu1 %1054, %v69_v23   ;;  %v1364_v53 = vpop.permute.xlu2 %124 }
  0x80   :  { %387 = vperm.xlu2 %1055, %v73_v51   ;;  %v725_v51 = vld [vmem:[%s1960_s3 + $0x20] sm:$0xff] }
  0x81   :  { %189 = vperm.xlu0 %1057, %v76_v59   ;;  %383 = vperm.xlu1 %1054, %v1301_v27   ;;  %v1379_v0 = vpop.permute.xlu2 %139  ;;  %v324_v2 = vpop.permute.xlu0 %323 }
  0x82   :  { %v424_v3 = vsub.f32 %v324_v2, %v1370_v60  ;;  %v425_v5 = vsub.f32 %v324_v2, %v1372_v61  ;;  %v95_v6 = vpop.permute.xlu1 %94 }
  0x83   :  { %v218_v8 = vsub.f32 %v95_v6, %v1374_v62  ;;  %v219_v9 = vsub.f32 %v95_v6, %v1376_v63 }
  0x84   :  { %v474_v10 = vmul.f32 %v424_v3, %v424_v3  ;;  %v475_v11 = vmul.f32 %v425_v5, %v425_v5 }
  0x85   :  { %v268_v12 = vmul.f32 %v218_v8, %v218_v8  ;;  %v269_v13 = vmul.f32 %v219_v9, %v219_v9  ;;  %v732_v8 = vld [vmem:[%s1960_s3 + $0x58] sm:$0xff] }
  0x87   :  { %v1389_v15 = vadd.f32 %v474_v10, %v268_v12  ;;  %v1391_v16 = vadd.f32 %v475_v11, %v269_v13  ;;  %v728_v11 = vld [vmem:[%s1960_s3 + $0x38] sm:$0xff]  ;;  %v727_v12 = vld [vmem:[%s1960_s3 + $0x30] sm:$0xff] }
  0x88   :  { %399 = vperm.xlu2 %1055, %v76_v59  }
  0x89   :  { %204 = vperm.xlu0 %1057, %v79_v14   ;;  %395 = vperm.xlu1 %1054, %v1312_v31   ;;  %v1394_v17 = vpop.permute.xlu2 %154  ;;  %v344_v18 = vpop.permute.xlu0 %343  ;;  %v726_v31 = vld [vmem:[%s1960_s3 + $0x28] sm:$0xff] }
  0x8a   :  { %v1396_v19 = vpop.permute.xlu1 %99  ;;  %v434_v21 = vsub.f32 %v344_v18, %v1370_v60  ;;  %v435_v4 = vsub.f32 %v344_v18, %v1372_v61 }
  0x8c   :  { %v484_v25 = vmul.f32 %v434_v21, %v434_v21  ;;  %v485_v26 = vmul.f32 %v435_v4, %v435_v4 }
  0x90   :  { %411 = vperm.xlu2 %1055, %v79_v14  }
  0x91   :  { %749 = vperm.xlu0 %1057, %v721_v20   ;;  %407 = vperm.xlu1 %1054, %v1323_v35   ;;  %v1404_v22 = vpop.permute.xlu2 %169  ;;  %v356_v23 = vpop.permute.xlu0 %355  ;;  %v722_v35 = vld [vmem:[%s1960_s3 + $0x8] sm:$0xff] }
  0x92   :  { %v120_v24 = vpop.permute.xlu1 %119  ;;  %v440_v36 = vsub.f32 %v356_v23, %v1370_v60  ;;  %v441_v37 = vsub.f32 %v356_v23, %v1372_v61 }
  0x93   :  { %v228_v27 = vsub.f32 %v120_v24, %v1374_v62  ;;  %v229_v28 = vsub.f32 %v120_v24, %v1376_v63 }
  0x94   :  { %v490_v43 = vmul.f32 %v440_v36, %v440_v36  ;;  %v491_v44 = vmul.f32 %v441_v37, %v441_v37 }
  0x95   :  { %v278_v29 = vmul.f32 %v228_v27, %v228_v27  ;;  %v279_v30 = vmul.f32 %v229_v28, %v229_v28  ;;  %v735_v28 = vld [vmem:[%s1960_s3 + $0x70] sm:$0xff] }
  0x97   :  { %v1411_v32 = vadd.f32 %v484_v25, %v278_v29  ;;  %v1413_v33 = vadd.f32 %v485_v26, %v279_v30 }
  0x98   :  { %1059 = vset.pattern.permute.xlu2 %v1202_v1 }
  0x99   :  { %774 = vperm.xlu0 %1057, %v726_v31   ;;  %1058 = vset.pattern.permute.xlu1 %v1202_v1  ;;  %v1425_v38 = vpop.permute.xlu2 %184  ;;  %v368_v39 = vpop.permute.xlu0 %367  ;;  %v731_v31 = vld [vmem:[%s1960_s3 + $0x50] sm:$0xff] }
  0x9a   :  { %v135_v40 = vpop.permute.xlu1 %134  ;;  %759 = vperm.xlu2 %1059, %v723_v34   ;;  %754 = vperm.xlu1 %1058, %v722_v35   ;;  %v446_v54 = vsub.f32 %v368_v39, %v1370_v60  ;;  %v447_v55 = vsub.f32 %v368_v39, %v1372_v61  ;;  %v730_v34 = vld [vmem:[%s1960_s3 + $0x48] sm:$0xff] }
  0x9b   :  { %v234_v41 = vsub.f32 %v135_v40, %v1374_v62  ;;  %v235_v42 = vsub.f32 %v135_v40, %v1376_v63 }
  0x9c   :  { %v496_v3 = vmul.f32 %v446_v54, %v446_v54  ;;  %v497_v5 = vmul.f32 %v447_v55, %v447_v55  ;;  %v734_v54 = vld [vmem:[%s1960_s3 + $0x68] sm:$0xff]  ;;  %v733_v55 = vld [vmem:[%s1960_s3 + $0x60] sm:$0xff] }
  0x9d   :  { %v284_v46 = vmul.f32 %v234_v41, %v234_v41  ;;  %v285_v47 = vmul.f32 %v235_v42, %v235_v42 }
  0x9f   :  { %v1432_v50 = vadd.f32 %v490_v43, %v284_v46  ;;  %v1434_v1 = vadd.f32 %v491_v44, %v285_v47 }
  0xa1   :  { %789 = vperm.xlu0 %1057, %v729_v49   ;;  %v1444_v56 = vpop.permute.xlu2 %199  ;;  %v380_v57 = vpop.permute.xlu0 %379  ;;  %v738_v49 = vld [vmem:[%s1960_s3 + $0x88] sm:$0xff] }
  0xa2   :  { %v150_v58 = vpop.permute.xlu1 %149  ;;  %769 = vperm.xlu2 %1059, %v725_v51   ;;  %764 = vperm.xlu1 %1058, %v724_v52   ;;  %v452_v13 = vsub.f32 %v380_v57, %v1370_v60  ;;  %v453_v14 = vsub.f32 %v380_v57, %v1372_v61 }
  0xa3   :  { %v240_v59 = vsub.f32 %v150_v58, %v1374_v62  ;;  %v241_v2 = vsub.f32 %v150_v58, %v1376_v63 }
  0xa4   :  { %v502_v24 = vmul.f32 %v452_v13, %v452_v13  ;;  %v503_v25 = vmul.f32 %v453_v14, %v453_v14  ;;  %v741_v13 = vld [vmem:[%s1960_s3 + $0xa0] sm:$0xff] }
  0xa5   :  { %v290_v6 = vmul.f32 %v240_v59, %v240_v59  ;;  %v291_v7 = vmul.f32 %v241_v2, %v241_v2 }
  0xa7   :  { %v1451_v9 = vadd.f32 %v496_v3, %v290_v6  ;;  %v1453_v10 = vadd.f32 %v497_v5, %v291_v7 }
  0xa9   :  { %804 = vperm.xlu0 %1057, %v732_v8   ;;  %v392_v18 = vpop.permute.xlu0 %391 }
  0xaa   :  { %v165_v20 = vpop.permute.xlu1 %164  ;;  %784 = vperm.xlu2 %1059, %v728_v11   ;;  %v1463_v21 = vpop.permute.xlu2 %319  ;;  %779 = vperm.xlu1 %1058, %v727_v12   ;;  %v458_v35 = vsub.f32 %v392_v18, %v1370_v60  ;;  %v459_v36 = vsub.f32 %v392_v18, %v1372_v61 }
  0xab   :  { %v246_v4 = vsub.f32 %v165_v20, %v1374_v62  ;;  %v247_v23 = vsub.f32 %v165_v20, %v1376_v63  ;;  %v737_v20 = vld [vmem:[%s1960_s3 + $0x80] sm:$0xff] }
  0xac   :  { %v508_v43 = vmul.f32 %v458_v35, %v458_v35  ;;  %v509_v44 = vmul.f32 %v459_v36, %v459_v36 }
  0xad   :  { %v296_v26 = vmul.f32 %v246_v4, %v246_v4  ;;  %v297_v27 = vmul.f32 %v247_v23, %v247_v23  ;;  %v736_v4 = vld [vmem:[%s1960_s3 + $0x78] sm:$0xff] }
  0xaf   :  { %v1470_v29 = vadd.f32 %v502_v24, %v296_v26  ;;  %v1472_v30 = vadd.f32 %v503_v25, %v297_v27  ;;  %v744_v26 = vld [vmem:[%s1960_s3 + $0xb8] sm:$0xff] }
  0xb0   :  { %v740_v27 = vld [vmem:[%s1960_s3 + $0x98] sm:$0xff] }
  0xb1   :  { %819 = vperm.xlu0 %1057, %v735_v28   ;;  %v404_v37 = vpop.permute.xlu0 %403 }
  0xb2   :  { %v180_v39 = vpop.permute.xlu1 %179  ;;  %799 = vperm.xlu2 %1059, %v731_v31   ;;  %v1482_v40 = vpop.permute.xlu2 %331  ;;  %794 = vperm.xlu1 %1058, %v730_v34   ;;  %v464_v57 = vsub.f32 %v404_v37, %v1370_v60  ;;  %v465_v58 = vsub.f32 %v404_v37, %v1372_v61  ;;  %v739_v31 = vld [vmem:[%s1960_s3 + $0x90] sm:$0xff] }
  0xb3   :  { %v252_v41 = vsub.f32 %v180_v39, %v1374_v62  ;;  %v253_v42 = vsub.f32 %v180_v39, %v1376_v63 }
  0xb4   :  { %v514_v7 = vmul.f32 %v464_v57, %v464_v57  ;;  %v515_v8 = vmul.f32 %v465_v58, %v465_v58  ;;  %v225_v57 = vsub.f32 %v1354_v48, %v1376_v63  ;;  %v1548_v58 = vstv %s1045_s9 }
  0xb5   :  { %v302_v46 = vmul.f32 %v252_v41, %v252_v41  ;;  %v303_v47 = vmul.f32 %v253_v42, %v253_v42 }
  0xb7   :  { %v1489_v51 = vadd.f32 %v508_v43, %v302_v46  ;;  %v1491_v52 = vadd.f32 %v509_v44, %v303_v47  ;;  %v222_v46 = vsub.f32 %v1348_v45, %v1374_v62  ;;  %v223_v47 = vsub.f32 %v1348_v45, %v1376_v63 }
  0xb9   :  { %834 = vperm.xlu0 %1057, %v738_v49  }
  0xba   :  { %v195_v59 = vpop.permute.xlu1 %194  ;;  %814 = vperm.xlu2 %1059, %v734_v54   ;;  %v340_v2 = vpop.permute.xlu2 %339  ;;  %809 = vperm.xlu1 %1058, %v733_v55   ;;  %v743_v54 = vld [vmem:[%s1960_s3 + $0xb0] sm:$0xff]  ;;  %v224_v55 = vsub.f32 %v1354_v48, %v1374_v62  ;;  %v575_v48 = vsub.f32 %v1548_v58, %v1389_v15  ;;  %v236_v15 = vsub.f32 %v1379_v0, %v1374_v62 }
  0xbb   :  { %v258_v3 = vsub.f32 %v195_v59, %v1374_v62  ;;  %v259_v5 = vsub.f32 %v195_v59, %v1376_v63  ;;  %v1503_v6 = vpop.permute.xlu0 %84  ;;  %v432_v28 = vsub.f32 %v340_v2, %v1370_v60  ;;  %v433_v34 = vsub.f32 %v340_v2, %v1372_v61  ;;  %v742_v2 = vld [vmem:[%s1960_s3 + $0xa8] sm:$0xff] }
  0xbd   :  { %v308_v11 = vmul.f32 %v258_v3, %v258_v3  ;;  %v309_v12 = vmul.f32 %v259_v5, %v259_v5  ;;  %v482_v39 = vmul.f32 %v432_v28, %v432_v28  ;;  %v483_v42 = vmul.f32 %v433_v34, %v433_v34 }
  0xbe   :  { %v231_v28 = vsub.f32 %v1364_v53, %v1376_v63  ;;  %v576_v34 = vsub.f32 %v1548_v58, %v1391_v16 }
  0xbf   :  { %v1508_v14 = vadd.f32 %v514_v7, %v308_v11  ;;  %v1510_v18 = vadd.f32 %v515_v8, %v309_v12  ;;  %v1560_v7 = vmul.f32 %v222_v46, %v222_v46  ;;  %v1562_v8 = vmul.f32 %v223_v47, %v223_v47 }
  0xc0   :  { %v221_v47 = vsub.f32 %v1396_v19, %v1376_v63 }
  0xc1   :  { %1963 = vst [vmem:[#allocation8_spill] sm:$0xff] %v1510_v18  ;;  %849 = vperm.xlu0 %1057, %v741_v13  }
  0xc2   :  { %829 = vperm.xlu2 %1059, %v737_v20   ;;  %v352_v23 = vpop.permute.xlu2 %351  ;;  %824 = vperm.xlu1 %1058, %v736_v4   ;;  %v1569_v20 = vmul.f32 %v224_v55, %v224_v55  ;;  %v1571_v4 = vmul.f32 %v225_v57, %v225_v57  ;;  %v1602_v55 = vmul.f32 %v236_v15, %v236_v15 }
  0xc3   :  { %v1518_v24 = vpop.permute.xlu0 %89  ;;  %v1520_v25 = vpop.permute.xlu1 %315  ;;  %v438_v3 = vsub.f32 %v352_v23, %v1370_v60  ;;  %v439_v11 = vsub.f32 %v352_v23, %v1372_v61  ;;  %v237_v23 = vsub.f32 %v1379_v0, %v1376_v63  ;;  %v220_v0 = vsub.f32 %v1396_v19, %v1374_v62 }
  0xc5   :  { %v1622_v15 = vmul.f32 %v220_v0, %v220_v0  ;;  %v254_v0 = vsub.f32 %v1425_v38, %v1374_v62 }
  0xc9   :  { %864 = vperm.xlu0 %1057, %v744_v26   ;;  %v230_v26 = vsub.f32 %v1364_v53, %v1374_v62  ;;  %v243_v53 = vsub.f32 %v1394_v17, %v1376_v63 }
  0xca   :  { %844 = vperm.xlu2 %1059, %v740_v27   ;;  %v364_v35 = vpop.permute.xlu2 %363  ;;  %839 = vperm.xlu1 %1058, %v739_v31  }
  0xcb   :  { %v115_v36 = vpop.permute.xlu0 %114  ;;  %v1533_v37 = vpop.permute.xlu1 %327  ;;  %v1589_v46 = vmul.f32 %v230_v26, %v230_v26  ;;  %v444_v19 = vsub.f32 %v364_v35, %v1370_v60  ;;  %v1616_v26 = vmul.f32 %v243_v53, %v243_v53 }
  0xcc   :  { %v226_v41 = vsub.f32 %v115_v36, %v1374_v62  ;;  %v227_v43 = vsub.f32 %v115_v36, %v1376_v63  ;;  %v242_v36 = vsub.f32 %v1394_v17, %v1374_v62  ;;  %v585_v17 = vsub.f32 %v1548_v58, %v1411_v32 }
  0xce   :  { %v276_v44 = vmul.f32 %v226_v41, %v226_v41  ;;  %v277_v49 = vmul.f32 %v227_v43, %v227_v43  ;;  %v489_v43 = vmul.f32 %v439_v11, %v439_v11 }
  0xd0   :  { %v1550_v59 = vadd.f32 %v482_v39, %v276_v44  ;;  %v1555_v45 = vadd.f32 %v483_v42, %v277_v49  ;;  %v488_v39 = vmul.f32 %v438_v3, %v438_v3  ;;  %v629_v42 = vmul.f32 1.442695, %v575_v48  ;;  %v745_v49 = vld [vmem:[%s1960_s3 + $0xc0] sm:$0xff] }
  0xd1   :  { %v631_v3 = vmul.f32 1.442695, %v576_v34  ;;  %v445_v48 = vsub.f32 %v364_v35, %v1372_v61  ;;  %v248_v34 = vsub.f32 %v1404_v22, %v1374_v62 }
  0xd2   :  { %859 = vperm.xlu2 %1059, %v743_v54   ;;  %v1558_v5 = vpop.permute.xlu2 %375  ;;  %854 = vperm.xlu1 %1058, %v742_v2   ;;  %v1600_v54 = vmul.f32 %v231_v28, %v231_v28  ;;  %v1608_v2 = vmul.f32 %v237_v23, %v237_v23  ;;  %1060 = vpow2.f32 %v629_v42  ;;  %v1624_v23 = vmul.f32 %v221_v47, %v221_v47 }
  0xd3   :  { %v130_v12 = vpop.permute.xlu0 %129  ;;  %v1567_v13 = vpop.permute.xlu1 %335  ;;  %v495_v42 = vmul.f32 %v445_v48, %v445_v48  ;;  %1062 = vpow2.f32 %v631_v3  ;;  %v255_v47 = vsub.f32 %v1425_v38, %v1376_v63  ;;  %v1648_v3 = vmul.f32 %v248_v34, %v248_v34 }
  0xd4   :  { %v232_v27 = vsub.f32 %v130_v12, %v1374_v62  ;;  %v233_v31 = vsub.f32 %v130_v12, %v1376_v63  ;;  %v1614_v12 = vmul.f32 %v242_v36, %v242_v36  ;;  %v249_v36 = vsub.f32 %v1404_v22, %v1376_v63 }
  0xd5   :  { %v428_v22 = vsub.f32 %v1482_v40, %v1370_v60  ;;  %1966 = vst [vmem:[#allocation11_spill] sm:$0xff] %v1648_v3  ;;  %v597_v38 = vsub.f32 %v1548_v58, %v1451_v9  ;;  %v1662_v34 = vmul.f32 %v254_v0, %v254_v0  ;;  %v451_v9 = vsub.f32 %v1558_v5, %v1372_v61 }
  0xd6   :  { %v282_v41 = vmul.f32 %v232_v27, %v232_v27  ;;  %v283_v44 = vmul.f32 %v233_v31, %v233_v31  ;;  %v586_v27 = vsub.f32 %v1548_v58, %v1413_v33  ;;  %v591_v33 = vsub.f32 %v1548_v58, %v1432_v50 }
  0xd7   :  { %v1650_v48 = vmul.f32 %v249_v36, %v249_v36  ;;  %1968 = vst [vmem:[#allocation13_spill] sm:$0xff] %v1662_v34  ;;  %v1664_v36 = vmul.f32 %v255_v47, %v255_v47  ;;  %v501_v34 = vmul.f32 %v451_v9, %v451_v9  ;;  %v421_v9 = vsub.f32 %v1520_v25, %v1372_v61 }
  0xd8   :  { %v1595_v16 = vadd.f32 %v488_v39, %v282_v41  ;;  %v1606_v57 = vadd.f32 %v489_v43, %v283_v44  ;;  %v649_v39 = vmul.f32 1.442695, %v585_v17  ;;  %v494_v41 = vmul.f32 %v444_v19, %v444_v19  ;;  %v1646_v19 = vpop.eup %1060 }
  0xd9   :  { %v651_v44 = vmul.f32 1.442695, %v586_v27  ;;  %1967 = vst [vmem:[#allocation12_spill] sm:$0xff] %v1650_v48  ;;  %v661_v27 = vmul.f32 1.442695, %v591_v33 }
  0xda   :  { %v1612_v11 = vpop.permute.xlu2 %387  ;;  %869 = vperm.xlu1 %1058, %v745_v49   ;;  %v592_v49 = vsub.f32 %v1548_v58, %v1434_v1  ;;  %1064 = vpow2.f32 %v649_v39  ;;  %v598_v1 = vsub.f32 %v1548_v58, %v1453_v10  ;;  %1969 = vst [vmem:[#allocation14_spill] sm:$0xff] %v1664_v36 }
  0xdb   :  { %v145_v32 = vpop.permute.xlu0 %144  ;;  %v1620_v28 = vpop.permute.xlu1 %347  ;;  %1066 = vpow2.f32 %v651_v44  ;;  %v673_v44 = vmul.f32 1.442695, %v597_v38 }
  0xdc   :  { %v238_v35 = vsub.f32 %v145_v32, %v1374_v62  ;;  %v239_v31 = vsub.f32 %v145_v32, %v1376_v63  ;;  %v429_v32 = vsub.f32 %v1482_v40, %v1372_v61  ;;  %v663_v10 = vmul.f32 1.442695, %v592_v49 }
  0xdd   :  { %v1672_v40 = vsub.f32 %v1444_v56, %v1374_v62  ;;  %1068 = vpow2.f32 %v661_v27  ;;  %v675_v0 = vmul.f32 1.442695, %v598_v1 }
  0xde   :  { %v288_v53 = vmul.f32 %v238_v35, %v238_v35  ;;  %v289_v43 = vmul.f32 %v239_v31, %v239_v31  ;;  %v450_v35 = vsub.f32 %v1558_v5, %v1370_v60  ;;  %v479_v47 = vmul.f32 %v429_v32, %v429_v32 }
  0xdf   :  { %1970 = vst [vmem:[#allocation15_spill] sm:$0xff] %v1672_v40  ;;  %v214_v40 = vsub.f32 %v1503_v6, %v1374_v62  ;;  %1070 = vpow2.f32 %v663_v10  ;;  %v423_v10 = vsub.f32 %v1463_v21, %v1372_v61 }
  0xe0   :  { %v1642_v17 = vadd.f32 %v494_v41, %v288_v53  ;;  %v1644_v50 = vadd.f32 %v495_v42, %v289_v43  ;;  %v478_v41 = vmul.f32 %v428_v22, %v428_v22  ;;  %v1675_v53 = vpop.eup %1062  ;;  %v1679_v43 = vsub.f32 %v1444_v56, %v1376_v63 }
  0xe1   :  { %v500_v49 = vmul.f32 %v450_v35, %v450_v35  ;;  %v420_v22 = vsub.f32 %v1520_v25, %v1370_v60  ;;  %v1686_v27 = vpop.eup %1064  ;;  %v422_v56 = vsub.f32 %v1463_v21, %v1370_v60  ;;  %v603_v35 = vsub.f32 %v1548_v58, %v1470_v29 }
  0xe2   :  { %1964 = vst [vmem:[#allocation9_spill] sm:$0xff] %v1642_v17  ;;  %v1660_v31 = vpop.permute.xlu2 %399  ;;  %v528_v38 = vadd.f32 %v478_v41, %v1560_v7  ;;  %v1693_v32 = vpop.eup %1066  ;;  %1072 = vpow2.f32 %v673_v44  ;;  %v456_v7 = vsub.f32 %v1612_v11, %v1370_v60  ;;  %v264_v25 = vmul.f32 %v214_v40, %v214_v40 }
  0xe3   :  { %1965 = vst [vmem:[#allocation10_spill] sm:$0xff] %v1644_v50  ;;  %v160_v39 = vpop.permute.xlu0 %159  ;;  %v1668_v33 = vpop.permute.xlu1 %359  ;;  %1074 = vpow2.f32 %v675_v0  ;;  %v604_v21 = vsub.f32 %v1548_v58, %v1472_v30  ;;  %v216_v0 = vsub.f32 %v1518_v24, %v1374_v62  ;;  %v472_v18 = vmul.f32 %v422_v56, %v422_v56 }
  0xe4   :  { %v244_v42 = vsub.f32 %v160_v39, %v1374_v62  ;;  %1971 = vst [vmem:[#allocation16_spill] sm:$0xff] %v1679_v43  ;;  %v245_v5 = vsub.f32 %v160_v39, %v1376_v63  ;;  %v215_v39 = vsub.f32 %v1503_v6, %v1376_v63  ;;  %v1711_v29 = vpop.eup %1068  ;;  %v529_v6 = vadd.f32 %v479_v47, %v1562_v8 }
  0xe5   :  { %v471_v8 = vmul.f32 %v421_v9, %v421_v9  ;;  %v1723_v40 = vpop.eup %1070  ;;  %v506_v47 = vmul.f32 %v456_v7, %v456_v7  ;;  %v473_v9 = vmul.f32 %v423_v10, %v423_v10  ;;  %v266_v56 = vmul.f32 %v216_v0, %v216_v0 }
  0xe6   :  { %v294_v36 = vmul.f32 %v244_v42, %v244_v42  ;;  %v295_v50 = vmul.f32 %v245_v5, %v245_v5  ;;  %v579_v5 = vsub.f32 %v1548_v58, %v528_v38  ;;  %v580_v30 = vsub.f32 %v1548_v58, %v529_v6 }
  0xe7   :  { %v217_v38 = vsub.f32 %v1518_v24, %v1376_v63  ;;  %v430_v24 = vsub.f32 %v1567_v13, %v1370_v60  ;;  %v463_v10 = vsub.f32 %v1660_v31, %v1372_v61 }
  0xe8   :  { %v1691_v1 = vadd.f32 %v500_v49, %v294_v36  ;;  %v1701_v42 = vadd.f32 %v501_v34, %v295_v50  ;;  %v457_v36 = vsub.f32 %v1612_v11, %v1372_v61  ;;  %v470_v50 = vmul.f32 %v420_v22, %v420_v22 }
  0xea   :  { %1972 = vst [vmem:[#allocation17_spill] sm:$0xff] %v1691_v1  ;;  %v1709_v41 = vpop.permute.xlu2 %411  ;;  %v265_v1 = vmul.f32 %v215_v39, %v215_v39  ;;  %v507_v22 = vmul.f32 %v457_v36, %v457_v36  ;;  %v520_v48 = vadd.f32 %v470_v50, %v264_v25  ;;  %v1731_v39 = vpop.eup %1072  ;;  %v462_v25 = vsub.f32 %v1660_v31, %v1370_v60 }
  0xeb   :  { %1973 = vst [vmem:[#allocation18_spill] sm:$0xff] %v1701_v42  ;;  %v175_v34 = vpop.permute.xlu0 %174  ;;  %v1714_v44 = vpop.permute.xlu1 %371  ;;  %v685_v42 = vmul.f32 1.442695, %v603_v35  ;;  %v746_v35 = vld [vmem:[%s1961_s4] sm:$0x3]  ;;  %s1203_s4 = smov [#allocation4]  }
  0xec   :  { %v250_v49 = vsub.f32 %v175_v34, %v1374_v62  ;;  %v251_v11 = vsub.f32 %v175_v34, %v1376_v63  ;;  %1974 = vst [vmem:[#allocation19_spill] sm:$0xff] %v1731_v39  ;;  %v637_v34 = vmul.f32 1.442695, %v579_v5  ;;  %v1737_v36 = vpop.eup %1074  ;;  %v521_v6 = vadd.f32 %v471_v8, %v265_v1  ;;  %s1031_s19 = sshll.u32 %s1203_s4, 4  ;;  %s1032_s19 = int_to_ptr.vmem [resolvable:$true] %s1031_s19 }
  0xed   :  { %1977 = vst [vmem:[#allocation22_spill] sm:$0xff] %v1737_v36  ;;  %1076 = vpow2.f32 %v685_v42  ;;  %v1743_v50 = vmul.f32 1.442695, %v604_v21  ;;  %v267_v5 = vmul.f32 %v217_v38, %v217_v38  ;;  %v431_v1 = vsub.f32 %v1567_v13, %v1372_v61 }
  0xee   :  { %v300_v43 = vmul.f32 %v250_v49, %v250_v49  ;;  %v301_v17 = vmul.f32 %v251_v11, %v251_v11  ;;  %v571_v49 = vsub.f32 %v1548_v58, %v520_v48  ;;  %1078 = vpow2.f32 %v637_v34 }
  0xef   :  { %v1756_v8 = vperm.slane %v746_v35, 1  ;;  %v512_v48 = vmul.f32 %v462_v25, %v462_v25  ;;  %v513_v38 = vmul.f32 %v463_v10, %v463_v10  ;;  %v1762_v36 = vadd.f32 %v473_v9, %v267_v5 }
  0xf0   :  { %v1733_v3 = vadd.f32 %v506_v47, %v300_v43  ;;  %v1735_v7 = vadd.f32 %v507_v22, %v301_v17  ;;  %v1747_v43 = vperm.slane %v746_v35, 0  ;;  %v639_v17 = vmul.f32 1.442695, %v580_v30 }
  0xf1   :  { %v1758_v47 = vadd.f32 %v472_v18, %v266_v56  ;;  %v572_v22 = vsub.f32 %v1548_v58, %v521_v6  ;;  %v480_v30 = vmul.f32 %v430_v24, %v430_v24  ;;  %v621_v34 = vmul.f32 1.442695, %v571_v49 }
  0xf2   :  { %1975 = vst [vmem:[#allocation20_spill] sm:$0xff] %v1733_v3  ;;  %v481_v39 = vmul.f32 %v431_v1, %v431_v1  ;;  %v436_v35 = vsub.f32 %v1620_v28, %v1370_v60  ;;  %v437_v18 = vsub.f32 %v1620_v28, %v1372_v61  ;;  %v426_v9 = vsub.f32 %v1533_v37, %v1370_v60 }
  0xf3   :  { %1976 = vst [vmem:[#allocation21_spill] sm:$0xff] %v1735_v7  ;;  %v190_v11 = vpop.permute.xlu0 %189  ;;  %v1752_v0 = vpop.permute.xlu1 %383  ;;  %v623_v25 = vmul.f32 1.442695, %v572_v22  ;;  %v427_v10 = vsub.f32 %v1533_v37, %v1372_v61  ;;  %1080 = vpow2.f32 %v639_v17  ;;  %v573_v28 = vsub.f32 %v1548_v58, %v1758_v47 }
  0xf4   :  { %v256_v42 = vsub.f32 %v190_v11, %v1374_v62  ;;  %v257_v21 = vsub.f32 %v190_v11, %v1376_v63  ;;  %v760_v31 = vpop.permute.xlu2 %759  ;;  %v1766_v11 = vpop.eup %1076  ;;  %v468_v1 = vsub.f32 %v1709_v41, %v1370_v60  ;;  %v574_v17 = vsub.f32 %v1548_v58, %v1762_v36 }
  0xf5   :  { %v881_v3 = vmul.f32 %v1747_v43, %v760_v31  ;;  %v882_v24 = vmul.f32 %v1756_v8, %v760_v31  ;;  %v1079_v49 = vpop.eup %1078  ;;  %v469_v31 = vsub.f32 %v1709_v41, %v1372_v61  ;;  %1082 = vpow2.f32 %v621_v34 }
  0xf6   :  { %v306_v7 = vmul.f32 %v256_v42, %v256_v42  ;;  %v307_v13 = vmul.f32 %v257_v21, %v257_v21  ;;  %v531_v42 = vadd.f32 %v481_v39, %v1571_v4  ;;  %v486_v21 = vmul.f32 %v436_v35, %v436_v35 }
  0xf7   :  { %v931_v5 = vadd.f32 %v1646_v19, %v881_v3  ;;  %v932_v37 = vadd.f32 %v1675_v53, %v882_v24  ;;  %1084 = vpow2.f32 %v623_v25  ;;  %v476_v4 = vmul.f32 %v426_v9, %v426_v9 }
  0xf8   :  { %v1770_v56 = vadd.f32 %v512_v48, %v306_v7  ;;  %v1772_v6 = vadd.f32 %v513_v38, %v307_v13  ;;  %v530_v7 = vadd.f32 %v480_v30, %v1569_v20  ;;  %v487_v20 = vmul.f32 %v437_v18, %v437_v18 }
  0xf9   :  { %981 = vst [vmem:[#allocation4 + $0x20] sm:$0xff] %v931_v5  ;;  %v477_v39 = vmul.f32 %v427_v10, %v427_v10  ;;  %v518_v30 = vmul.f32 %v468_v1, %v468_v1  ;;  %v582_v13 = vsub.f32 %v1548_v58, %v531_v42  ;;  %v536_v36 = vadd.f32 %v486_v21, %v1589_v46 }
  0xfa   :  { %982 = vst [vmem:[#allocation4 + $0x28] sm:$0xff] %v932_v37  ;;  %v581_v53 = vsub.f32 %v1548_v58, %v530_v7  ;;  %v519_v34 = vmul.f32 %v469_v31, %v469_v31  ;;  %v537_v18 = vadd.f32 %v487_v20, %v1600_v54  ;;  %v526_v9 = vadd.f32 %v476_v4, %v1622_v15 }
  0xfb   :  { %v205_v19 = vpop.permute.xlu0 %204  ;;  %v1789_v3 = vpop.permute.xlu1 %395  ;;  %v527_v10 = vadd.f32 %v477_v39, %v1624_v23  ;;  %v442_v5 = vsub.f32 %v1668_v33, %v1370_v60  ;;  %1086 = vpow2.f32 %v1743_v50  ;;  %v443_v54 = vsub.f32 %v1668_v33, %v1372_v61 }
  0xfc   :  { %v262_v47 = vsub.f32 %v205_v19, %v1374_v62  ;;  %v770_v22 = vpop.permute.xlu2 %769  ;;  %v263_v41 = vsub.f32 %v205_v19, %v1376_v63  ;;  %v1081_v62 = vpop.eup %1080  ;;  %v641_v1 = vmul.f32 1.442695, %v581_v53  ;;  %v609_v15 = vsub.f32 %v1548_v58, %v1489_v51 }
  0xfd   :  { %v885_v38 = vmul.f32 %v1747_v43, %v770_v22  ;;  %v886_v25 = vmul.f32 %v1756_v8, %v770_v22  ;;  %v1083_v46 = vpop.eup %1082  ;;  %v610_v23 = vsub.f32 %v1548_v58, %v1491_v52  ;;  %v587_v31 = vsub.f32 %v1548_v58, %v536_v36 }
  0xfe   :  { %v312_v48 = vmul.f32 %v262_v47, %v262_v47  ;;  %v313_v35 = vmul.f32 %v263_v41, %v263_v41  ;;  %v1085_v21 = vpop.eup %1084  ;;  %v625_v50 = vmul.f32 1.442695, %v573_v28  ;;  %v588_v20 = vsub.f32 %v1548_v58, %v537_v18 }
  0xff   :  { %v935_v63 = vadd.f32 %v1079_v49, %v885_v38  ;;  %v936_v42 = vadd.f32 %v1081_v62, %v886_v25  ;;  %v643_v49 = vmul.f32 1.442695, %v582_v13  ;;  %v627_v4 = vmul.f32 1.442695, %v574_v17 }
 0x100   :  { %v1800_v24 = vadd.f32 %v518_v30, %v312_v48  ;;  %v1807_v7 = vadd.f32 %v519_v34, %v313_v35  ;;  %v577_v51 = vsub.f32 %v1548_v58, %v526_v9  ;;  %v578_v52 = vsub.f32 %v1548_v58, %v527_v10 }
 0x101   :  { %985 = vst [vmem:[#allocation4 + $0x40] sm:$0xff] %v935_v63  ;;  %v492_v39 = vmul.f32 %v442_v5, %v442_v5  ;;  %1088 = vpow2.f32 %v641_v1  ;;  %v493_v41 = vmul.f32 %v443_v54, %v443_v54  ;;  %v653_v28 = vmul.f32 1.442695, %v587_v31  ;;  %v1826_v13 = vpop.eup %1086 }
 0x102   :  { %986 = vst [vmem:[#allocation4 + $0x48] sm:$0xff] %v936_v42  ;;  %1090 = vpow2.f32 %v643_v49  ;;  %v697_v36 = vmul.f32 1.442695, %v609_v15  ;;  %v655_v17 = vmul.f32 1.442695, %v588_v20  ;;  %v448_v34 = vsub.f32 %v1714_v44, %v1370_v60 }
 0x103   :  { %v750_v37 = vpop.permute.xlu0 %749  ;;  %v1817_v19 = vpop.permute.xlu1 %407  ;;  %1092 = vpow2.f32 %v625_v50  ;;  %v542_v35 = vadd.f32 %v492_v39, %v1602_v55  ;;  %v449_v62 = vsub.f32 %v1714_v44, %v1372_v61  ;;  %v1835_v63 = vmul.f32 1.442695, %v610_v23 }
 0x104   :  { %v877_v33 = vmul.f32 %v1747_v43, %v750_v37  ;;  %v878_v47 = vmul.f32 %v1756_v8, %v750_v37  ;;  %v785_v22 = vpop.permute.xlu2 %784  ;;  %1094 = vpow2.f32 %v627_v4  ;;  %v583_v9 = vsub.f32 %v1548_v58, %v1550_v59 }
 0x105   :  { %v891_v48 = vmul.f32 %v1747_v43, %v785_v22  ;;  %v892_v38 = vmul.f32 %v1756_v8, %v785_v22  ;;  %v543_v10 = vadd.f32 %v493_v41, %v1608_v2  ;;  %v584_v5 = vsub.f32 %v1548_v58, %v1555_v45 }
 0x106   :  { %v927_v53 = vadd.f32 %v1083_v46, %v877_v33  ;;  %v928_v30 = vadd.f32 %v1085_v21, %v878_v47  ;;  %v633_v55 = vmul.f32 1.442695, %v577_v51  ;;  %v635_v46 = vmul.f32 1.442695, %v578_v52 }
 0x107   :  { %v941_v18 = vadd.f32 %v1686_v27, %v891_v48  ;;  %v942_v25 = vadd.f32 %v1693_v32, %v892_v38  ;;  %1096 = vpow2.f32 %v653_v28  ;;  %v1089_v1 = vpop.eup %1088  ;;  %v498_v27 = vmul.f32 %v448_v34, %v448_v34 }
 0x108   :  { %977 = vst [vmem:[#allocation4] sm:$0xff] %v927_v53  ;;  %1098 = vpow2.f32 %v655_v17  ;;  %v1091_v59 = vpop.eup %1090  ;;  %v593_v2 = vsub.f32 %v1548_v58, %v542_v35  ;;  %v499_v21 = vmul.f32 %v449_v62, %v449_v62  ;;  %v594_v31 = vsub.f32 %v1548_v58, %v543_v10 }
 0x109   :  { %978 = vst [vmem:[#allocation4 + $0x8] sm:$0xff] %v928_v30  ;;  %v1093_v49 = vpop.eup %1092  ;;  %v454_v33 = vsub.f32 %v1752_v0, %v1370_v60  ;;  %1100 = vpow2.f32 %v697_v36  ;;  %v548_v52 = vadd.f32 %v498_v27, %v1614_v12  ;;  %v455_v39 = vsub.f32 %v1752_v0, %v1372_v61 }
 0x10a   :  { %991 = vst [vmem:[#allocation4 + $0x70] sm:$0xff] %v941_v18  ;;  %v1095_v51 = vpop.eup %1094  ;;  %1102 = vpow2.f32 %v633_v55  ;;  %v665_v30 = vmul.f32 1.442695, %v593_v2  ;;  %v549_v28 = vadd.f32 %v499_v21, %v1616_v26  ;;  %v645_v38 = vmul.f32 1.442695, %v583_v9  ;;  %v1980_v2 = vld [vmem:[#allocation22_spill] sm:$0xff] }
 0x10b   :  { %v775_v44 = vpop.permute.xlu0 %774  ;;  %992 = vst [vmem:[#allocation4 + $0x78] sm:$0xff] %v942_v25  ;;  %v647_v36 = vmul.f32 1.442695, %v584_v5  ;;  %1104 = vpow2.f32 %v635_v46  ;;  %v589_v12 = vsub.f32 %v1548_v58, %v1595_v16  ;;  %v590_v0 = vsub.f32 %v1548_v58, %v1606_v57 }
 0x10c   :  { %v887_v32 = vmul.f32 %v1747_v43, %v775_v44  ;;  %v888_v54 = vmul.f32 %v1756_v8, %v775_v44  ;;  %v800_v42 = vpop.permute.xlu2 %799  ;;  %v755_v23 = vpop.permute.xlu1 %754  ;;  %v667_v17 = vmul.f32 1.442695, %v594_v31  ;;  %v504_v34 = vmul.f32 %v454_v33, %v454_v33  ;;  %v1982_v33 = vld [vmem:[#allocation8_spill] sm:$0xff] }
 0x10d   :  { %v897_v45 = vmul.f32 %v1747_v43, %v800_v42  ;;  %v898_v15 = vmul.f32 %v1756_v8, %v800_v42  ;;  %v879_v20 = vmul.f32 %v1747_v43, %v755_v23  ;;  %v880_v4 = vmul.f32 %v1756_v8, %v755_v23  ;;  %v1097_v53 = vpop.eup %1096  ;;  %v1979_v42 = vld [vmem:[#allocation19_spill] sm:$0xff]  ;;  %v1981_v23 = vld [vmem:[#allocation12_spill] sm:$0xff] }
 0x10e   :  { %v937_v37 = vadd.f32 %v1089_v1, %v887_v32  ;;  %v938_v50 = vadd.f32 %v1091_v59, %v888_v54  ;;  %v1099_v48 = vpop.eup %1098  ;;  %v599_v35 = vsub.f32 %v1548_v58, %v548_v52  ;;  %v505_v62 = vmul.f32 %v455_v39, %v455_v39  ;;  %v1978_v32 = vld [vmem:[#allocation11_spill] sm:$0xff]  ;;  %v1983_v52 = vld [vmem:[#allocation9_spill] sm:$0xff] }
 0x10f   :  { %v947_v47 = vadd.f32 %v1711_v29, %v897_v45  ;;  %v948_v22 = vadd.f32 %v1723_v40, %v898_v15  ;;  %v929_v41 = vadd.f32 %v1093_v49, %v879_v20  ;;  %v930_v29 = vadd.f32 %v1095_v51, %v880_v4  ;;  %v1870_v5 = vpop.eup %1100 }
 0x110   :  { %987 = vst [vmem:[#allocation4 + $0x50] sm:$0xff] %v937_v37  ;;  %v615_v40 = vsub.f32 %v1548_v58, %v1508_v14  ;;  %1106 = vpow2.f32 %v665_v30  ;;  %v600_v9 = vsub.f32 %v1548_v58, %v549_v28  ;;  %v1103_v27 = vpop.eup %1102  ;;  %v554_v54 = vadd.f32 %v504_v34, %v1978_v32 }
 0x111   :  { %988 = vst [vmem:[#allocation4 + $0x58] sm:$0xff] %v938_v50  ;;  %1108 = vpow2.f32 %v667_v17  ;;  %v1105_v45 = vpop.eup %1104  ;;  %v677_v15 = vmul.f32 1.442695, %v599_v35  ;;  %v555_v49 = vadd.f32 %v505_v62, %v1981_v23  ;;  %v460_v50 = vsub.f32 %v1789_v3, %v1370_v60  ;;  %v1988_v23 = vld [vmem:[#allocation14_spill] sm:$0xff] }
 0x112   :  { %997 = vst [vmem:[#allocation4 + $0xa0] sm:$0xff] %v947_v47  ;;  %1110 = vpow2.f32 %v1835_v63  ;;  %v679_v37 = vmul.f32 1.442695, %v600_v9  ;;  %v616_v47 = vsub.f32 %v1548_v58, %v1982_v33  ;;  %v657_v4 = vmul.f32 1.442695, %v589_v12 }
 0x113   :  { %998 = vst [vmem:[#allocation4 + $0xa8] sm:$0xff] %v948_v22  ;;  %v790_v26 = vpop.permute.xlu0 %789  ;;  %1112 = vpow2.f32 %v645_v38  ;;  %v709_v22 = vmul.f32 1.442695, %v615_v40  ;;  %v659_v51 = vmul.f32 1.442695, %v590_v0  ;;  %v595_v39 = vsub.f32 %v1548_v58, %v1983_v52 }
 0x114   :  { %979 = vst [vmem:[#allocation4 + $0x10] sm:$0xff] %v929_v41  ;;  %v893_v14 = vmul.f32 %v1747_v43, %v790_v26  ;;  %v894_v18 = vmul.f32 %v1756_v8, %v790_v26  ;;  %v815_v25 = vpop.permute.xlu2 %814  ;;  %v765_v10 = vpop.permute.xlu1 %764  ;;  %1114 = vpow2.f32 %v647_v36  ;;  %v605_v41 = vsub.f32 %v1548_v58, %v554_v54 }
 0x115   :  { %980 = vst [vmem:[#allocation4 + $0x18] sm:$0xff] %v930_v29  ;;  %v903_v16 = vmul.f32 %v1747_v43, %v815_v25  ;;  %v904_v57 = vmul.f32 %v1756_v8, %v815_v25  ;;  %v883_v44 = vmul.f32 %v1747_v43, %v765_v10  ;;  %v884_v1 = vmul.f32 %v1756_v8, %v765_v10  ;;  %v1984_v10 = vld [vmem:[#allocation10_spill] sm:$0xff] }
 0x116   :  { %v943_v55 = vadd.f32 %v1097_v53, %v893_v14  ;;  %v944_v46 = vadd.f32 %v1099_v48, %v894_v18  ;;  %v1107_v63 = vpop.eup %1106  ;;  %v461_v53 = vsub.f32 %v1789_v3, %v1372_v61  ;;  %1116 = vpow2.f32 %v677_v15 }
 0x117   :  { %v953_v59 = vadd.f32 %v1979_v42, %v903_v16  ;;  %v954_v21 = vadd.f32 %v1980_v2, %v904_v57  ;;  %v933_v31 = vadd.f32 %v1103_v27, %v883_v44  ;;  %v934_v20 = vadd.f32 %v1105_v45, %v884_v1  ;;  %v1109_v38 = vpop.eup %1108  ;;  %v1985_v1 = vld [vmem:[#allocation13_spill] sm:$0xff] }
 0x118   :  { %993 = vst [vmem:[#allocation4 + $0x80] sm:$0xff] %v943_v55  ;;  %v606_v28 = vsub.f32 %v1548_v58, %v555_v49  ;;  %1118 = vpow2.f32 %v679_v37  ;;  %v510_v36 = vmul.f32 %v460_v50, %v460_v50  ;;  %v1111_v17 = vpop.eup %1110  ;;  %v689_v18 = vmul.f32 1.442695, %v605_v41 }
 0x119   :  { %994 = vst [vmem:[#allocation4 + $0x88] sm:$0xff] %v944_v46  ;;  %v1113_v14 = vpop.eup %1112  ;;  %v511_v25 = vmul.f32 %v461_v53, %v461_v53  ;;  %1120 = vpow2.f32 %v709_v22  ;;  %v596_v55 = vsub.f32 %v1548_v58, %v1984_v10  ;;  %v466_v32 = vsub.f32 %v1817_v19, %v1370_v60 }
 0x11a   :  { %1003 = vst [vmem:[#allocation4 + $0xd0] sm:$0xff] %v953_v59  ;;  %v1115_v57 = vpop.eup %1114  ;;  %v691_v46 = vmul.f32 1.442695, %v606_v28  ;;  %1122 = vpow2.f32 %v657_v4  ;;  %v560_v27 = vadd.f32 %v510_v36, %v1985_v1  ;;  %v1987_v59 = vld [vmem:[#allocation16_spill] sm:$0xff]  ;;  %v669_v15 = vmul.f32 1.442695, %v595_v39 }
 0x11b   :  { %1004 = vst [vmem:[#allocation4 + $0xd8] sm:$0xff] %v954_v21  ;;  %v805_v30 = vpop.permute.xlu0 %804  ;;  %v311_v2 = vmul.f32 %v1987_v59, %v1987_v59  ;;  %v711_v21 = vmul.f32 1.442695, %v616_v47  ;;  %1124 = vpow2.f32 %v659_v51  ;;  %v561_v49 = vadd.f32 %v511_v25, %v1988_v23 }
 0x11c   :  { %983 = vst [vmem:[#allocation4 + $0x30] sm:$0xff] %v933_v31  ;;  %v899_v29 = vmul.f32 %v1747_v43, %v805_v30  ;;  %v900_v48 = vmul.f32 %v1756_v8, %v805_v30  ;;  %v830_v40 = vpop.permute.xlu2 %829  ;;  %v780_v3 = vpop.permute.xlu1 %779  ;;  %1126 = vpow2.f32 %v689_v18  ;;  %v467_v60 = vsub.f32 %v1817_v19, %v1372_v61 }
 0x11d   :  { %984 = vst [vmem:[#allocation4 + $0x38] sm:$0xff] %v934_v20  ;;  %v909_v12 = vmul.f32 %v1747_v43, %v830_v40  ;;  %v910_v0 = vmul.f32 %v1756_v8, %v830_v40  ;;  %v889_v35 = vmul.f32 %v1747_v43, %v780_v3  ;;  %v890_v62 = vmul.f32 %v1756_v8, %v780_v3  ;;  %v1117_v42 = vpop.eup %1116 }
 0x11e   :  { %v949_v34 = vadd.f32 %v1107_v63, %v899_v29  ;;  %v950_v26 = vadd.f32 %v1109_v38, %v900_v48  ;;  %v1119_v45 = vpop.eup %1118  ;;  %v671_v37 = vmul.f32 1.442695, %v596_v55  ;;  %1128 = vpow2.f32 %v691_v46  ;;  %v1989_v38 = vld [vmem:[#allocation17_spill] sm:$0xff] }
 0x11f   :  { %v959_v9 = vadd.f32 %v1766_v11, %v909_v12  ;;  %v960_v16 = vadd.f32 %v1826_v13, %v910_v0  ;;  %v939_v44 = vadd.f32 %v1113_v14, %v889_v35  ;;  %v940_v54 = vadd.f32 %v1115_v57, %v890_v62  ;;  %v1986_v11 = vld [vmem:[#allocation15_spill] sm:$0xff]  ;;  %v1121_v61 = vpop.eup %1120  ;;  %v1990_v12 = vld [vmem:[#allocation18_spill] sm:$0xff] }
 0x120   :  { %999 = vst [vmem:[#allocation4 + $0xb0] sm:$0xff] %v949_v34  ;;  %v310_v13 = vmul.f32 %v1986_v11, %v1986_v11  ;;  %v611_v47 = vsub.f32 %v1548_v58, %v560_v27  ;;  %v516_v22 = vmul.f32 %v466_v32, %v466_v32  ;;  %v1123_v53 = vpop.eup %1122  ;;  %v612_v30 = vsub.f32 %v1548_v58, %v561_v49 }
 0x121   :  { %1000 = vst [vmem:[#allocation4 + $0xb8] sm:$0xff] %v950_v26  ;;  %v517_v28 = vmul.f32 %v467_v60, %v467_v60  ;;  %v1125_v40 = vpop.eup %1124  ;;  %1130 = vpow2.f32 %v711_v21  ;;  %v601_v36 = vsub.f32 %v1548_v58, %v1989_v38  ;;  %v602_v0 = vsub.f32 %v1548_v58, %v1990_v12  ;;  %v1992_v60 = vld [vmem:[#allocation21_spill] sm:$0xff] }
 0x122   :  { %1009 = vst [vmem:[#allocation4 + $0x100] sm:$0xff] %v959_v9  ;;  %v1127_v34 = vpop.eup %1126  ;;  %1132 = vpow2.f32 %v669_v15  ;;  %v701_v26 = vmul.f32 1.442695, %v611_v47  ;;  %v566_v35 = vadd.f32 %v516_v22, %v310_v13  ;;  %v1991_v15 = vld [vmem:[#allocation20_spill] sm:$0xff]  ;;  %v614_v38 = vsub.f32 %v1548_v58, %v1772_v6 }
 0x123   :  { %1010 = vst [vmem:[#allocation4 + $0x108] sm:$0xff] %v960_v16  ;;  %v820_v31 = vpop.permute.xlu0 %819  ;;  %1134 = vpow2.f32 %v671_v37  ;;  %v681_v25 = vmul.f32 1.442695, %v601_v36  ;;  %v683_v9 = vmul.f32 1.442695, %v602_v0  ;;  %v607_v23 = vsub.f32 %v1548_v58, %v1991_v15 }
 0x124   :  { %989 = vst [vmem:[#allocation4 + $0x60] sm:$0xff] %v939_v44  ;;  %v905_v50 = vmul.f32 %v1747_v43, %v820_v31  ;;  %v906_v20 = vmul.f32 %v1756_v8, %v820_v31  ;;  %v845_v33 = vpop.permute.xlu2 %844  ;;  %v795_v51 = vpop.permute.xlu1 %794  ;;  %1136 = vpow2.f32 %v701_v26  ;;  %v617_v55 = vsub.f32 %v1548_v58, %v566_v35 }
 0x125   :  { %990 = vst [vmem:[#allocation4 + $0x68] sm:$0xff] %v940_v54  ;;  %v915_v4 = vmul.f32 %v1747_v43, %v845_v33  ;;  %v916_v63 = vmul.f32 %v1756_v8, %v845_v33  ;;  %v895_v39 = vmul.f32 %v1747_v43, %v795_v51  ;;  %v896_v41 = vmul.f32 %v1756_v8, %v795_v51  ;;  %v1129_v14 = vpop.eup %1128 }
 0x126   :  { %v955_v19 = vadd.f32 %v1117_v42, %v905_v50  ;;  %v956_v52 = vadd.f32 %v1119_v45, %v906_v20  ;;  %v608_v31 = vsub.f32 %v1548_v58, %v1992_v60  ;;  %v713_v37 = vmul.f32 1.442695, %v617_v55 }
 0x127   :  { %v965_v29 = vadd.f32 %v1870_v5, %v915_v4  ;;  %v966_v48 = vadd.f32 %v1111_v17, %v916_v63  ;;  %v945_v3 = vadd.f32 %v1123_v53, %v895_v39  ;;  %v946_v62 = vadd.f32 %v1125_v40, %v896_v41  ;;  %v1131_v27 = vpop.eup %1130 }
 0x128   :  { %1005 = vst [vmem:[#allocation4 + $0xe0] sm:$0xff] %v955_v19  ;;  %v703_v5 = vmul.f32 1.442695, %v612_v30  ;;  %v567_v17 = vadd.f32 %v517_v28, %v311_v2  ;;  %v1133_v13 = vpop.eup %1132  ;;  %v693_v22 = vmul.f32 1.442695, %v607_v23 }
 0x129   :  { %1006 = vst [vmem:[#allocation4 + $0xe8] sm:$0xff] %v956_v52  ;;  %v1135_v45 = vpop.eup %1134  ;;  %v707_v35 = vmul.f32 1.442695, %v614_v38 }
 0x12a   :  { %1015 = vst [vmem:[#allocation4 + $0x130] sm:$0xff] %v965_v29  ;;  %1138 = vpow2.f32 %v703_v5  ;;  %v618_v59 = vsub.f32 %v1548_v58, %v567_v17  ;;  %v1137_v20 = vpop.eup %1136  ;;  %v613_v29 = vsub.f32 %v1548_v58, %v1770_v56 }
 0x12b   :  { %1016 = vst [vmem:[#allocation4 + $0x138] sm:$0xff] %v966_v48  ;;  %v835_v18 = vpop.permute.xlu0 %834  ;;  %1140 = vpow2.f32 %v681_v25  ;;  %v619_v25 = vsub.f32 %v1548_v58, %v1800_v24 }
 0x12c   :  { %995 = vst [vmem:[#allocation4 + $0x90] sm:$0xff] %v945_v3  ;;  %v911_v16 = vmul.f32 %v1747_v43, %v835_v18  ;;  %v912_v57 = vmul.f32 %v1756_v8, %v835_v18  ;;  %v860_v10 = vpop.permute.xlu2 %859  ;;  %v810_v1 = vpop.permute.xlu1 %809  ;;  %1142 = vpow2.f32 %v683_v9  ;;  %v715_v33 = vmul.f32 1.442695, %v618_v59 }
 0x12d   :  { %996 = vst [vmem:[#allocation4 + $0x98] sm:$0xff] %v946_v62  ;;  %v921_v46 = vmul.f32 %v1747_v43, %v860_v10  ;;  %v922_v44 = vmul.f32 %v1756_v8, %v860_v10  ;;  %v901_v42 = vmul.f32 %v1747_v43, %v810_v1  ;;  %v902_v11 = vmul.f32 %v1756_v8, %v810_v1 }
 0x12e   :  { %v961_v32 = vadd.f32 %v1127_v34, %v911_v16  ;;  %v962_v54 = vadd.f32 %v1129_v14, %v912_v57  ;;  %1144 = vpow2.f32 %v713_v37  ;;  %v705_v0 = vmul.f32 1.442695, %v613_v29 }
 0x12f   :  { %v971_v2 = vadd.f32 %v1121_v61, %v921_v46  ;;  %v972_v21 = vadd.f32 %v1131_v27, %v922_v44  ;;  %v951_v49 = vadd.f32 %v1133_v13, %v901_v42  ;;  %v952_v50 = vadd.f32 %v1135_v45, %v902_v11 }
 0x130   :  { %1011 = vst [vmem:[#allocation4 + $0x110] sm:$0xff] %v961_v32  ;;  %v1139_v51 = vpop.eup %1138  ;;  %v695_v61 = vmul.f32 1.442695, %v608_v31  ;;  %1146 = vpow2.f32 %v715_v33  ;;  %v620_v57 = vsub.f32 %v1548_v58, %v1807_v7  ;;  %v717_v10 = vmul.f32 1.442695, %v619_v25 }
 0x131   :  { %1012 = vst [vmem:[#allocation4 + $0x118] sm:$0xff] %v962_v54  ;;  %v1141_v52 = vpop.eup %1140  ;;  %1148 = vpow2.f32 %v693_v22 }
 0x132   :  { %1021 = vst [vmem:[#allocation4 + $0x160] sm:$0xff] %v971_v2  ;;  %v1143_v28 = vpop.eup %1142  ;;  %1150 = vpow2.f32 %v695_v61  ;;  %v719_v55 = vmul.f32 1.442695, %v620_v57 }
 0x133   :  { %1022 = vst [vmem:[#allocation4 + $0x168] sm:$0xff] %v972_v21  ;;  %v850_v47 = vpop.permute.xlu0 %849  ;;  %1152 = vpow2.f32 %v705_v0 }
 0x134   :  { %1001 = vst [vmem:[#allocation4 + $0xc0] sm:$0xff] %v951_v49  ;;  %v917_v4 = vmul.f32 %v1747_v43, %v850_v47  ;;  %v918_v63 = vmul.f32 %v1756_v8, %v850_v47  ;;  %v825_v19 = vpop.permute.xlu1 %824  ;;  %v1145_v36 = vpop.eup %1144  ;;  %1154 = vpow2.f32 %v707_v35 }
 0x135   :  { %1002 = vst [vmem:[#allocation4 + $0xc8] sm:$0xff] %v952_v50  ;;  %v907_v53 = vmul.f32 %v1747_v43, %v825_v19  ;;  %v908_v30 = vmul.f32 %v1756_v8, %v825_v19  ;;  %1156 = vpow2.f32 %v717_v10 }
 0x136   :  { %v967_v39 = vadd.f32 %v1137_v20, %v917_v4  ;;  %v968_v41 = vadd.f32 %v1139_v51, %v918_v63  ;;  %v1147_v26 = vpop.eup %1146  ;;  %1158 = vpow2.f32 %v719_v55 }
 0x137   :  { %v957_v48 = vadd.f32 %v1141_v52, %v907_v53  ;;  %v958_v40 = vadd.f32 %v1143_v28, %v908_v30  ;;  %v1149_v62 = vpop.eup %1148 }
 0x138   :  { %1017 = vst [vmem:[#allocation4 + $0x140] sm:$0xff] %v967_v39  ;;  %v1151_v18 = vpop.eup %1150 }
 0x139   :  { %1018 = vst [vmem:[#allocation4 + $0x148] sm:$0xff] %v968_v41  ;;  %v1153_v44 = vpop.eup %1152 }
 0x13a   :  { %1007 = vst [vmem:[#allocation4 + $0xf0] sm:$0xff] %v957_v48  ;;  %v1155_v32 = vpop.eup %1154 }
 0x13b   :  { %1008 = vst [vmem:[#allocation4 + $0xf8] sm:$0xff] %v958_v40  ;;  %v865_v12 = vpop.permute.xlu0 %864  ;;  %v1157_v58 = vpop.eup %1156 }
 0x13c   :  { %v923_v3 = vmul.f32 %v1747_v43, %v865_v12  ;;  %v924_v34 = vmul.f32 %v1756_v8, %v865_v12  ;;  %v840_v56 = vpop.permute.xlu1 %839  ;;  %v1159_v13 = vpop.eup %1158 }
 0x13d   :  { %v913_v17 = vmul.f32 %v1747_v43, %v840_v56  ;;  %v914_v6 = vmul.f32 %v1756_v8, %v840_v56 }
 0x13e   :  { %v973_v14 = vadd.f32 %v1145_v36, %v923_v3  ;;  %v974_v5 = vadd.f32 %v1147_v26, %v924_v34 }
 0x13f   :  { %v963_v9 = vadd.f32 %v1149_v62, %v913_v17  ;;  %v964_v16 = vadd.f32 %v1151_v18, %v914_v6 }
 0x140   :  { %1023 = vst [vmem:[#allocation4 + $0x170] sm:$0xff] %v973_v14 }
 0x141   :  { %1024 = vst [vmem:[#allocation4 + $0x178] sm:$0xff] %v974_v5 }
 0x142   :  { %1013 = vst [vmem:[#allocation4 + $0x120] sm:$0xff] %v963_v9 }
 0x143   :  { %1014 = vst [vmem:[#allocation4 + $0x128] sm:$0xff] %v964_v16 }
 0x144   :  { %v855_v46 = vpop.permute.xlu1 %854 }
 0x145   :  { %v919_v1 = vmul.f32 %v1747_v43, %v855_v46  ;;  %v920_v27 = vmul.f32 %v1756_v8, %v855_v46 }
 0x147   :  { %v969_v24 = vadd.f32 %v1153_v44, %v919_v1  ;;  %v970_v54 = vadd.f32 %v1155_v32, %v920_v27 }
 0x149   :  { %1019 = vst [vmem:[#allocation4 + $0x150] sm:$0xff] %v969_v24 }
 0x14a   :  { %1020 = vst [vmem:[#allocation4 + $0x158] sm:$0xff] %v970_v54 }
 0x14c   :  { %v870_v42 = vpop.permute.xlu1 %869 }
 0x14d   :  { %v925_v7 = vmul.f32 %v1747_v43, %v870_v42  ;;  %v926_v11 = vmul.f32 %v1756_v8, %v870_v42 }
 0x14f   :  { %v975_v59 = vadd.f32 %v1157_v58, %v925_v7  ;;  %v976_v2 = vadd.f32 %v1159_v13, %v926_v11 }
 0x151   :  { %1025 = vst [vmem:[#allocation4 + $0x180] sm:$0xff] %v975_v59 }
 0x152   :  { %1026 = vst [vmem:[#allocation4 + $0x188] sm:$0xff] %v976_v2 }
 0x153   :  { %1039 = dma.vmem_to_hbm [thread:$0]  %s1032_s19, 6400, %s1034_s21, [#allocation5], %s1204_s1, %s1204_s1, %s1205_s22  }
 0x154   :  { %1198 = dma.done.wait [#allocation5], 6400  }
 0x155   :  { %1199 = vsyncadd [#allocation5], 4294960896 }
 0x156   :  { %1044 = vsyncpa [#allocation5], 1 }

</bundles_post_ra>
